<compile_context>
chip_gen: v7x
topology: tpu7x:2x2x1
jax: 0.10.0
libtpu: 0.0.40
codegen_flags: <defaults>
</compile_context>

<pallas_src>
import functools

import jax
import jax.numpy as jnp
from jax.experimental import pallas as pl
from jax.experimental.pallas import tpu as pltpu


def _round_up(x, m):
    return ((x + m - 1) // m) * m


def policy_kernel(x_ref, w1_ref, b1_ref, w2_ref, b2_ref, w3_ref, b3_ref,
                  mean_ref):
    # Three matmuls on the MXU (f32 accumulation); bias/ReLU/sigmoid stay in
    # f32 on VPU/EUP (v5e-safe).  Hidden activations are cast to the weight
    # dtype only for the MXU inputs on the bf16 path.
    x = x_ref[...]

    h1 = jnp.dot(x, w1_ref[...], preferred_element_type=jnp.float32) + b1_ref[...]
    h1 = jnp.maximum(h1, 0.0)

    h2 = jnp.dot(h1.astype(w2_ref.dtype), w2_ref[...],
                 preferred_element_type=jnp.float32) + b2_ref[...]
    h2 = jnp.maximum(h2, 0.0)

    logits = jnp.dot(h2.astype(w3_ref.dtype), w3_ref[...],
                     preferred_element_type=jnp.float32) + b3_ref[...]
    # True-width store: [tb, action_dim].  Masked lanes cost the same number
    # of vst ops as the old padded store but 32x less HBM writeback.
    mean_ref[...] = jax.nn.sigmoid(logits)


@functools.partial(jax.jit, static_argnames=("tile_b", "use_bf16"))
def _policy_net_forward(state, params, *, tile_b, use_bf16):
    w1, b1, w2, b2, w3, b3, log_std = params
    B, state_dim = state.shape
    hidden = w1.shape[1]
    action_dim = w3.shape[1]

    # ---- optional bf16 matmul inputs (f32 accumulate stays in-kernel) ------
    if use_bf16:
        x_in = state.astype(jnp.bfloat16)
        w1k = w1.astype(jnp.bfloat16)
        w2k = w2.astype(jnp.bfloat16)
        w3k = w3.astype(jnp.bfloat16)
    else:
        x_in, w1k, w2k, w3k = state, w1, w2, w3

    # ---- batch tiling -------------------------------------------------------
    # bf16 packs 16 sublanes per vreg tile -> 16-row alignment; f32 -> 8.
    align = 16 if use_bf16 else 8
    b_al = _round_up(B, align)
    tb = min(tile_b, b_al)
    # v7x has 2 TensorCores: if the whole batch fits in one tile, split it so
    # the parallel batch axis has >=2 grid steps (also restores DMA overlap).
    if tb >= b_al and b_al >= 2 * align:
        tb = _round_up(pl.cdiv(b_al, 2), align)
    tb = _round_up(tb, align)
    grid = (pl.cdiv(B, tb),)
    # NOTE: if B is not a multiple of tb, the tail block computes over
    # out-of-range rows; those rows never reach HBM (store is clipped).

    x_spec = pl.BlockSpec((tb, state_dim), lambda i: (i, 0))
    const = lambda shape: pl.BlockSpec(shape, lambda i: (0, 0))  # VMEM-resident
    out_spec = pl.BlockSpec((tb, action_dim), lambda i: (i, 0))

    weight_bytes = sum(int(a.size) * a.dtype.itemsize
                       for a in (w1k, b1, w2k, b2, w3k, b3))

    # VMEM budget: double-buffered x block + out block + (once) weights.
    vmem_need = (2 * tb * (state_dim * x_in.dtype.itemsize + action_dim * 4)
                 + 2 * weight_bytes)
    vmem_limit = None
    if vmem_need > (12 << 20):  # only raise the scoped limit if actually needed
        vmem_limit = int(min(_round_up(int(vmem_need * 5 // 4), 1 << 20), 48 << 20))

    cost = pl.CostEstimate(
        flops=2 * B * (state_dim * hidden + hidden * hidden + hidden * action_dim),
        transcendentals=B * action_dim,                 # sigmoid ~ 1 exp/elem
        bytes_accessed=int(x_in.size) * x_in.dtype.itemsize
                       + 4 * B * action_dim + weight_bytes,
    )

    mean = pl.pallas_call(
        policy_kernel,
        out_shape=jax.ShapeDtypeStruct((B, action_dim), jnp.float32),
        grid=grid,
        in_specs=[
            x_spec,
            const((state_dim, hidden)),
            const((1, hidden)),
            const((hidden, hidden)),
            const((1, hidden)),
            const((hidden, action_dim)),
            const((1, action_dim)),
        ],
        out_specs=out_spec,
        compiler_params=pltpu.CompilerParams(
            dimension_semantics=("parallel",),
            vmem_limit_bytes=vmem_limit),
        cost_estimate=cost,
    )(x_in, w1k, b1, w2k, b2, w3k, b3)

    # std is a pure parameter transform -> wrapper-side (and cacheable).
    std = jnp.exp(log_std)
    return mean, std


def _default_use_bf16():
    # bf16 matmul inputs are the default on v6e/v7x (bandwidth win); f32
    # elsewhere so the numerics match the PyTorch reference bit-for-bit-ish.
    try:
        kind = jax.devices()[0].device_kind.lower()
        return any(tag in kind for tag in ("v6", "v7", "trillium"))
    except Exception:
        return False


def policy_net_forward(state, params, *, tile_b=8192, use_bf16=None):
    """state: [B, state_dim] f32. Returns (mean [B, action_dim], std [action_dim])."""
    if use_bf16 is None:
        use_bf16 = _default_use_bf16()
    return _policy_net_forward(state, params, tile_b=int(tile_b),
                               use_bf16=bool(use_bf16))


def init_params(key, state_dim, action_dim, hidden=64):
    """Deterministic synthetic params (PyTorch-style uniform fan-in init)."""
    ks = jax.random.split(key, 6)

    def linear(kw, kb, fan_in, fan_out):
        bound = 1.0 / jnp.sqrt(fan_in)
        # stored as [in, out] (transposed relative to torch's [out, in])
        w = jax.random.uniform(kw, (fan_in, fan_out), jnp.float32, -bound, bound)
        b = jax.random.uniform(kb, (1, fan_out), jnp.float32, -bound, bound)
        return w, b

    w1, b1 = linear(ks[0], ks[1], state_dim, hidden)
    w2, b2 = linear(ks[2], ks[3], hidden, hidden)
    w3, b3 = linear(ks[4], ks[5], hidden, action_dim)
    log_std = jnp.full((action_dim,), -0.5, dtype=jnp.float32)
    return (w1, b1, w2, b2, w3, b3, log_std)


def reference_forward(state, params):
    w1, b1, w2, b2, w3, b3, log_std = params
    h = jnp.maximum(state @ w1 + b1, 0.0)
    h = jnp.maximum(h @ w2 + b2, 0.0)
    mean = jax.nn.sigmoid(h @ w3 + b3)
    std = jnp.exp(log_std)
    return mean, std


if __name__ == "__main__":
    key = jax.random.PRNGKey(0)
    k_params, k_state = jax.random.split(key)

    B, state_dim, action_dim, hidden = 8, 16, 4, 64
    params = init_params(k_params, state_dim, action_dim, hidden)
    state = jax.random.normal(k_state, (B, state_dim), dtype=jnp.float32)

    ref_mean, ref_std = reference_forward(state, params)

    # f32 path: exact-match check against the reference.
    mean, std = jax.block_until_ready(
        policy_net_forward(state, params, use_bf16=False))
    assert mean.shape == (B, action_dim) and std.shape == (action_dim,)
    assert jnp.allclose(mean, ref_mean, atol=1e-5, rtol=1e-5)
    assert jnp.allclose(std, ref_std, atol=1e-6, rtol=1e-6)

    # bf16-input path (default on v6e/v7x): looser tolerance, accumulation
    # and bias/ReLU/sigmoid remain f32 inside the kernel.
    mean_bf16, _ = jax.block_until_ready(
        policy_net_forward(state, params, use_bf16=True))
    assert mean_bf16.shape == (B, action_dim)
    assert jnp.allclose(mean_bf16, ref_mean, atol=2e-2, rtol=2e-2)

    print("KERNEL_OK")
</pallas_src>

<mosaic_0001>
module attributes {stable_mosaic.version = 11 : i64} {
  func.func @policy_kernel(%arg0: i32, %arg1: memref<8x16xf32, #tpu.memory_space<vmem>>, %arg2: memref<16x64xf32, #tpu.memory_space<vmem>>, %arg3: memref<1x64xf32, #tpu.memory_space<vmem>>, %arg4: memref<64x64xf32, #tpu.memory_space<vmem>>, %arg5: memref<1x64xf32, #tpu.memory_space<vmem>>, %arg6: memref<64x4xf32, #tpu.memory_space<vmem>>, %arg7: memref<1x4xf32, #tpu.memory_space<vmem>>, %arg8: memref<8x4xf32, #tpu.memory_space<vmem>>) attributes {dimension_semantics = [#tpu.dimension_semantics<parallel>], iteration_bounds = array<i64: 1>, scalar_prefetch = 0 : i64, scratch_operands = 0 : i64, tpu.core_type = #tpu.core_type<tc>, window_params = [{transform_indices = @transform_0, window_bounds = array<i64: 8, 16>}, {pipeline_mode = #tpu.pipeline_mode<synchronous>, transform_indices = @transform_1, window_bounds = array<i64: 16, 64>}, {pipeline_mode = #tpu.pipeline_mode<synchronous>, transform_indices = @transform_2, window_bounds = array<i64: 1, 64>}, {pipeline_mode = #tpu.pipeline_mode<synchronous>, transform_indices = @transform_3, window_bounds = array<i64: 64, 64>}, {pipeline_mode = #tpu.pipeline_mode<synchronous>, transform_indices = @transform_4, window_bounds = array<i64: 1, 64>}, {pipeline_mode = #tpu.pipeline_mode<synchronous>, transform_indices = @transform_5, window_bounds = array<i64: 64, 4>}, {pipeline_mode = #tpu.pipeline_mode<synchronous>, transform_indices = @transform_6, window_bounds = array<i64: 1, 4>}, {transform_indices = @transform_7, window_bounds = array<i64: 8, 4>}]} {
    %c0 = arith.constant 0 : index
    %c0_0 = arith.constant 0 : index
    %0 = vector.load %arg1[%c0, %c0_0] : memref<8x16xf32, #tpu.memory_space<vmem>>, vector<8x16xf32>
    %c0_1 = arith.constant 0 : index
    %c0_2 = arith.constant 0 : index
    %1 = vector.load %arg2[%c0_1, %c0_2] : memref<16x64xf32, #tpu.memory_space<vmem>>, vector<16x64xf32>
    %cst = arith.constant dense<0.000000e+00> : vector<8x64xf32>
    %2 = tpu.matmul %0, %1, %cst {dimension_numbers = #tpu.dot_dimension_numbers<[1], [0], [0], [1], [0, 0, 1, 1], [], []>} : vector<8x16xf32>, vector<16x64xf32>, vector<8x64xf32> -> vector<8x64xf32>
    %c0_3 = arith.constant 0 : index
    %c0_4 = arith.constant 0 : index
    %3 = vector.load %arg3[%c0_3, %c0_4] : memref<1x64xf32, #tpu.memory_space<vmem>>, vector<1x64xf32>
    %4 = vector.broadcast %3 : vector<1x64xf32> to vector<8x64xf32>
    %5 = arith.addf %2, %4 : vector<8x64xf32>
    %cst_5 = arith.constant 0.000000e+00 : f32
    %6 = vector.broadcast %cst_5 : f32 to vector<8x64xf32>
    %7 = arith.maximumf %5, %6 : vector<8x64xf32>
    %c0_6 = arith.constant 0 : index
    %c0_7 = arith.constant 0 : index
    %8 = vector.load %arg4[%c0_6, %c0_7] : memref<64x64xf32, #tpu.memory_space<vmem>>, vector<64x64xf32>
    %cst_8 = arith.constant dense<0.000000e+00> : vector<8x64xf32>
    %9 = tpu.matmul %7, %8, %cst_8 {dimension_numbers = #tpu.dot_dimension_numbers<[1], [0], [0], [1], [0, 0, 1, 1], [], []>} : vector<8x64xf32>, vector<64x64xf32>, vector<8x64xf32> -> vector<8x64xf32>
    %c0_9 = arith.constant 0 : index
    %c0_10 = arith.constant 0 : index
    %10 = vector.load %arg5[%c0_9, %c0_10] : memref<1x64xf32, #tpu.memory_space<vmem>>, vector<1x64xf32>
    %11 = vector.broadcast %10 : vector<1x64xf32> to vector<8x64xf32>
    %12 = arith.addf %9, %11 : vector<8x64xf32>
    %cst_11 = arith.constant 0.000000e+00 : f32
    %13 = vector.broadcast %cst_11 : f32 to vector<8x64xf32>
    %14 = arith.maximumf %12, %13 : vector<8x64xf32>
    %c0_12 = arith.constant 0 : index
    %c0_13 = arith.constant 0 : index
    %15 = vector.load %arg6[%c0_12, %c0_13] : memref<64x4xf32, #tpu.memory_space<vmem>>, vector<64x4xf32>
    %cst_14 = arith.constant dense<0.000000e+00> : vector<8x4xf32>
    %16 = tpu.matmul %14, %15, %cst_14 {dimension_numbers = #tpu.dot_dimension_numbers<[1], [0], [0], [1], [0, 0, 1, 1], [], []>} : vector<8x64xf32>, vector<64x4xf32>, vector<8x4xf32> -> vector<8x4xf32>
    %c0_15 = arith.constant 0 : index
    %c0_16 = arith.constant 0 : index
    %17 = vector.load %arg7[%c0_15, %c0_16] : memref<1x4xf32, #tpu.memory_space<vmem>>, vector<1x4xf32>
    %18 = vector.broadcast %17 : vector<1x4xf32> to vector<8x4xf32>
    %19 = arith.addf %16, %18 : vector<8x4xf32>
    %20 = arith.negf %19 : vector<8x4xf32>
    %21 = math.exp %20 : vector<8x4xf32>
    %cst_17 = arith.constant 1.000000e+00 : f32
    %22 = vector.broadcast %cst_17 : f32 to vector<8x4xf32>
    %23 = arith.addf %22, %21 : vector<8x4xf32>
    %24 = arith.divf %22, %23 : vector<8x4xf32>
    %c0_18 = arith.constant 0 : index
    %c0_19 = arith.constant 0 : index
    %25 = vector.load %arg8[%c0_18, %c0_19] : memref<8x4xf32, #tpu.memory_space<vmem>>, vector<8x4xf32>
    tpu.vector_store %arg8[%c0_18, %c0_19], %24 {strides = array<i32>} : memref<8x4xf32, #tpu.memory_space<vmem>>, vector<8x4xf32>,
    return
  }
  func.func @transform_0(%arg0: i32) -> (i32, i32) {
    %c0_i32 = arith.constant 0 : i32
    %c0_i32_0 = arith.constant 0 : i32
    return %arg0, %c0_i32 : i32, i32
  }
  func.func @transform_1(%arg0: i32) -> (i32, i32) {
    %c0_i32 = arith.constant 0 : i32
    %c0_i32_0 = arith.constant 0 : i32
    %c0_i32_1 = arith.constant 0 : i32
    return %c0_i32, %c0_i32_0 : i32, i32
  }
  func.func @transform_2(%arg0: i32) -> (i32, i32) {
    %c0_i32 = arith.constant 0 : i32
    %c0_i32_0 = arith.constant 0 : i32
    %c0_i32_1 = arith.constant 0 : i32
    return %c0_i32, %c0_i32_0 : i32, i32
  }
  func.func @transform_3(%arg0: i32) -> (i32, i32) {
    %c0_i32 = arith.constant 0 : i32
    %c0_i32_0 = arith.constant 0 : i32
    %c0_i32_1 = arith.constant 0 : i32
    return %c0_i32, %c0_i32_0 : i32, i32
  }
  func.func @transform_4(%arg0: i32) -> (i32, i32) {
    %c0_i32 = arith.constant 0 : i32
    %c0_i32_0 = arith.constant 0 : i32
    %c0_i32_1 = arith.constant 0 : i32
    return %c0_i32, %c0_i32_0 : i32, i32
  }
  func.func @transform_5(%arg0: i32) -> (i32, i32) {
    %c0_i32 = arith.constant 0 : i32
    %c0_i32_0 = arith.constant 0 : i32
    %c0_i32_1 = arith.constant 0 : i32
    return %c0_i32, %c0_i32_0 : i32, i32
  }
  func.func @transform_6(%arg0: i32) -> (i32, i32) {
    %c0_i32 = arith.constant 0 : i32
    %c0_i32_0 = arith.constant 0 : i32
    %c0_i32_1 = arith.constant 0 : i32
    return %c0_i32, %c0_i32_0 : i32, i32
  }
  func.func @transform_7(%arg0: i32) -> (i32, i32) {
    %c0_i32 = arith.constant 0 : i32
    %c0_i32_0 = arith.constant 0 : i32
    return %arg0, %c0_i32 : i32, i32
  }
}

</mosaic_0001>

<bundles_post_ra>
// kernel: _policy_net_forward.1
= control target key start
LH: loop header
LB: loop body
LE: loop exit
PB: predicated region body
PF: predicated region fallthrough
CT: control target
= control target key end

     0   :  { %12 = vsyncpa [#allocation3], 0  ;;  %s619_s0 = inlined_call_operand.hbm [shape: f32[8,16], index: 0, kind: input, shape index: {}]   ;;  %s620_s1 = inlined_call_operand.vmem [shape: f32[16,64], index: 1, kind: input, shape index: {}]   ;;  %s621_s2 = inlined_call_operand.vmem [shape: f32[1,64], index: 2, kind: input, shape index: {}]   ;;  %s622_s3 = inlined_call_operand.vmem [shape: f32[64,64], index: 3, kind: input, shape index: {}]   ;;  %s623_s4 = inlined_call_operand.vmem [shape: f32[1,64], index: 4, kind: input, shape index: {}]   ;;  %s624_s5 = inlined_call_operand.vmem [shape: f32[64,4], index: 5, kind: input, shape index: {}]   ;;  %s625_s6 = inlined_call_operand.hbm [shape: f32[1,4], index: 6, kind: input, shape index: {}]   ;;  %s626_s7 = inlined_call_operand.vmem [shape: f32[8,4], index: 7, kind: output, shape index: {}]  }
   0x1   :  { %13 = vsyncpa [#allocation5], 0  ;;  %s484_s24 = smov [#allocation2]   ;;  %s485_s26 = smov [#allocation4]  }
   0x2   :  { %s20_s25 = sshll.u32 %s484_s24, 4  ;;  %s40_s27 = sshll.u32 %s485_s26, 4  ;;  %s21_s25 = int_to_ptr.vmem [resolvable:$true] %s20_s25  ;;  %s41_s27 = int_to_ptr.vmem [resolvable:$true] %s40_s27 }
   0x3   :  { %s436_s30 = scalar_lea.hbm %s619_s0, 128 }
   0x4   :  { %p437_p0 = scmp.ne.s32.totalorder %s619_s0, %s436_s30  ;;  %p440_p1 = scmp.lt.u32.totalorder %s436_s30, %s619_s0 }
   0x6   :  { %p442_p2 = pnand %p440_p1, %p437_p0 }
   0x8   :  { %445 = shalt.err (!%p442_p2)
}
   0x9   :  { %s446_s12 = scalar_lea.vmem %s21_s25, 128  ;;  %p451_p4 = scmp.lt.s32.totalorder %s21_s25, %s21_s25 }
   0xa   :  { %p447_p3 = scmp.ne.s32.totalorder %s21_s25, %s446_s12  ;;  %p452_p5 = scmp.lt.s32.totalorder %s446_s12, %s446_s12 }
   0xc   :  { %p453_p6 = por %p452_p5, %p451_p4 }
   0xe   :  { %p454_p7 = pnand %p453_p6, %p447_p3 }
  0x10   :  { %457 = shalt.err (!%p454_p7)
}
  0x11   :  { %23 = dma.hbm_to_vmem [thread:$0]  %s619_s0, 128, %s21_s25, [#allocation3]  }
  0x12   :  { %s458_s17 = scalar_lea.hbm %s625_s6, 16 }
  0x13   :  { %p459_p8 = scmp.ne.s32.totalorder %s625_s6, %s458_s17  ;;  %p462_p9 = scmp.lt.u32.totalorder %s458_s17, %s625_s6 }
  0x15   :  { %p464_p10 = pnand %p462_p9, %p459_p8 }
  0x17   :  { %467 = shalt.err (!%p464_p10)
}
  0x18   :  { %s468_s22 = scalar_lea.vmem %s41_s27, 16  ;;  %s472_s23 = scalar_lea.vmem %s41_s27, 32 }
  0x19   :  { %p469_p11 = scmp.ne.s32.totalorder %s41_s27, %s468_s22  ;;  %p473_p12 = scmp.lt.s32.totalorder %s41_s27, %s41_s27 }
  0x1a   :  { %p474_p13 = scmp.lt.s32.totalorder %s472_s23, %s468_s22 }
  0x1c   :  { %p475_p0 = por %p474_p13, %p473_p12 }
  0x1e   :  { %p476_p1 = pnand %p475_p0, %p469_p11 }
  0x20   :  { %479 = shalt.err (!%p476_p1)
}
  0x21   :  { %43 = dma.hbm_to_vmem [thread:$0]  %s625_s6, 16, %s41_s27, [#allocation5]  }
  0x22   :  { %480 = dma.done.wait [#allocation3], 128  }
  0x23   :  { %481 = vsyncadd [#allocation3], 4294967168 }
  0x24   :  { %482 = dma.done.wait [#allocation5], 16  }
  0x25   :  { %483 = vsyncadd [#allocation5], 4294967280  ;;  %v486_v0 = vmov 0.0|0.0   ;;  %vm487_vm0 = vmmov 0   ;;  %v488_v1 = vmov 0.0   ;;  %v51_v2 = vld [vmem:[%s620_s1] sm:$0xff] }
  0x26   :  { %400 = vmatprep.subr.bf16.mxu0 %v486_v0  ;;  %359 = vmatprep.mubr.msk.f32.mxu0 %vm487_vm0, %v488_v1  ;;  %v52_v3 = vld [vmem:[%s620_s1 + $0x8] sm:$0xff]  ;;  %v135_v5 = vld [vmem:[%s622_s3] sm:$0xff]  ;;  %v137_v7 = vld [vmem:[%s622_s3 + $0x10] sm:$0xff]  ;;  %vm60_vm1 = vcmask 130048   ;;  %vm150_vm2 = vcmask 523264   ;;  %vm319_vm3 = vcmask 31744  }
  0x27   :  { %403 = vmatprep.subr.bf16.mxu1 %v486_v0  ;;  %378 = vmatprep.mubr.msk.f32.mxu1 %vm487_vm0, %v488_v1  ;;  %v401_v4 = vpack.c.bf16 %v52_v3, %v51_v2  ;;  %v136_v6 = vld [vmem:[%s622_s3 + $0x8] sm:$0xff]  ;;  %v138_v9 = vld [vmem:[%s622_s3 + $0x18] sm:$0xff]  ;;  %v50_v10 = vld [vmem:[#allocation2] sm:$0xff] }
  0x28   :  { %v404_v8 = vpack.c.bf16 %v136_v6, %v135_v5  ;;  %v407_v11 = vpack.c.bf16 %v138_v9, %v137_v7  ;;  %v139_v12 = vld [vmem:[%s622_s3 + $0x20] sm:$0xff]  ;;  %v140_v13 = vld [vmem:[%s622_s3 + $0x28] sm:$0xff]  ;;  %v141_v15 = vld [vmem:[%s622_s3 + $0x30] sm:$0xff] }
  0x29   :  { %402 = vmatpush3.bf16.msra.mxu0 %v401_v4  ;;  %v410_v14 = vpack.c.bf16 %v140_v13, %v139_v12  ;;  %v142_v16 = vld [vmem:[%s622_s3 + $0x38] sm:$0xff]  ;;  %v225_v18 = vld [vmem:[%s624_s5] sm:$0xff]  ;;  %v226_v19 = vld [vmem:[%s624_s5 + $0x8] sm:$0xff] }
  0x2a   :  { %405 = vmatpush3.bf16.msra.mxu1 %v404_v8  ;;  %415 = vmatprep.subr.bf16.mxu0 %v486_v0  ;;  %v413_v17 = vpack.c.bf16 %v142_v16, %v141_v15  ;;  %v227_v20 = vld [vmem:[%s624_s5 + $0x10] sm:$0xff]  ;;  %v416_v21 = vpack.c.bf16 %v226_v19, %v225_v18  ;;  %v228_v22 = vld [vmem:[%s624_s5 + $0x18] sm:$0xff]  ;;  %v229_v24 = vld [vmem:[%s624_s5 + $0x20] sm:$0xff] }
  0x2b   :  { %406 = vmatprep.subr.bf16.mxu1 %v486_v0  ;;  %v419_v23 = vpack.c.bf16 %v228_v22, %v227_v20  ;;  %v230_v25 = vld [vmem:[%s624_s5 + $0x28] sm:$0xff]  ;;  %v327_v27 = vld [vmem:[%s621_s2] ss:$0 sm:$0xff]  ;;  %v231_v32 = vld [vmem:[%s624_s5 + $0x30] sm:$0xff] }
  0x2c   :  { %360 = vmatmul.mubr.msk.f32.vlgmr.msra.gmra.mrb[0].mxu0 %vm60_vm1, %v50_v10  ;;  %v422_v26 = vpack.c.bf16 %v230_v25, %v229_v24  ;;  %v232_v33 = vld [vmem:[%s624_s5 + $0x38] sm:$0xff]  ;;  %v329_v35 = vld [vmem:[%s623_s4] ss:$0 sm:$0xff]  ;;  %v331_v40 = vld [vmem:[#allocation4] ss:$0 sm:$0xff] }
  0x2d   :  { %397 = vmatprep.mubr.msk.f32.mxu0 %vm487_vm0, %v488_v1  ;;  %417 = vmatpush3.bf16.msra.mxu0 %v416_v21  ;;  %v425_v34 = vpack.c.bf16 %v232_v33, %v231_v32 }
  0x2e   :  { %408 = vmatpush3.bf16.msra.mxu1 %v407_v11  ;;  %418 = vmatprep.subr.bf16.mxu0 %v486_v0 }
  0x2f   :  { %409 = vmatprep.subr.bf16.mxu1 %v486_v0 }
  0x31   :  { %420 = vmatpush3.bf16.msra.mxu0 %v419_v23 }
  0x32   :  { %411 = vmatpush3.bf16.msra.mxu1 %v410_v14  ;;  %421 = vmatprep.subr.bf16.mxu0 %v486_v0 }
  0x33   :  { %412 = vmatprep.subr.bf16.mxu1 %v486_v0 }
  0x35   :  { %423 = vmatpush3.bf16.msra.mxu0 %v422_v26 }
  0x36   :  { %414 = vmatpush3.bf16.msra.mxu1 %v413_v17  ;;  %424 = vmatprep.subr.bf16.mxu0 %v486_v0 }
  0x39   :  { %426 = vmatpush3.bf16.msra.mxu0 %v425_v34 }
  0xff   :  { %v130_v28 = vpop.f32.mrb[0].mxu0 }
 0x100   :  { %v131_v29 = vadd.f32 %v327_v27, %v130_v28  ;;  %v361_v30 = vpop.f32.mrb[1].mxu0 }
 0x102   :  { %v134_v31 = vmax.f32 %v131_v29, 0.0 }
 0x104   :  { %379 = vmatmul.mubr.msk.f32.vlgmr.msra.gmra.mrb[0].mxu1 %vm150_vm2, %v134_v31 }
 0x1d7   :  { %v220_v36 = vpop.f32.mrb[0].mxu1 }
 0x1d8   :  { %v221_v37 = vadd.f32 %v329_v35, %v220_v36  ;;  %v380_v38 = vpop.f32.mrb[1].mxu1 }
 0x1da   :  { %v224_v39 = vmax.f32 %v221_v37, 0.0 }
 0x1dc   :  { %398 = vmatmul.mubr.msk.f32.vlgmr.msra.gmra.mrb[2].mxu0 %vm150_vm2, %v224_v39 }
 0x2af   :  { %v309_v41 = vpop.f32.mrb[2].mxu0 }
 0x2b0   :  { %v310_v42 = vadd.f32 %v331_v40, %v309_v41  ;;  %v399_v43 = vpop.f32.mrb[3].mxu0 }
 0x2b2   :  { %v333_v44 = vmul.f32 -1.442695, %v310_v42 }
 0x2b4   :  { %432 = vpow2.f32 %v333_v44 }
 0x2be   :  { %v433_v45 = vpop.eup %432 }
 0x2bf   :  { %v316_v46 = vadd.f32 1.0, %v433_v45 }
 0x2c1   :  { %434 = vrcp.f32 %v316_v46 }
 0x2cb   :  { %v435_v47 = vpop.eup %434 }
 0x2cc   :  { %320 = vst.msk [vmem:[%s626_s7] sm:$0xff] %vm319_vm3, %v435_v47 }
 0x2cd   :  { %325 = vsyncpa [#allocation3], 1 }
 0x2ce   :  { %326 = vsyncpa [#allocation5], 1 }

</bundles_post_ra>
